<compile_context>
chip_gen: v7x
topology: tpu7x:2x2x1
jax: 0.10.0
libtpu: 0.0.40
codegen_flags: <defaults>
</compile_context>

<pallas_src>
import functools

import jax
import jax.numpy as jnp
from jax import lax
from jax.experimental import pallas as pl
from jax.experimental.pallas import tpu as pltpu

# ----------------------------- example problem size ---------------------------
BATCH = 8
NUM_CLASSES = 4
TASK_NAMES = ("task_a", "task_b")
TASK_WEIGHTS = {"task_a": 1.0, "task_b": 0.5}

EPS = 1e-8
OUT_LANES = 128   # lane-dense output tile (unmasked vst)


# ---------------------------------- kernel -----------------------------------
def _cw_loss_kernel(
    packed_ref,      # (T*B, C+1) f32: lanes 0..C-1 = logits, lane C = label (float-coded)
    out_ref,         # (1, OUT_LANES) f32: lane 0 = total, lanes 1..T = per-task means
    *,
    T, B, C,
    conf_threshold,
    w_hc_correct,
    w_hc_wrong,
    w_low,
    task_weight_vec,  # static tuple of Python floats, length T
):
    TB = T * B
    data = packed_ref[...]                      # (TB, C+1)
    logits = data[:, :C]                        # (TB, C)
    tgt_f = data[:, C:C + 1]                    # (TB, 1) float-coded labels (exact)

    lane = lax.broadcasted_iota(jnp.int32, (TB, C), 1)   # class index per lane
    lane_f = lane.astype(jnp.float32)

    # numerically-stable softmax over classes (matches F.softmax(dim=1))
    m = jnp.max(logits, axis=-1, keepdims=True)          # (TB, 1)
    e = jnp.exp(logits - m)                               # (TB, C)
    probs = e / jnp.sum(e, axis=-1, keepdims=True)        # (TB, C)

    conf = jnp.max(probs, axis=-1, keepdims=True)         # (TB, 1)
    # first argmax index (float-coded, exact for small C) -> same tie-breaking
    # as torch.argmax (first index attaining the max)
    first_argmax = jnp.min(
        jnp.where(probs == conf, lane_f, float(C)),
        axis=-1, keepdims=True)                            # (TB, 1)
    # probs[target] via one-hot mask + lane reduce (no gather)
    p_true = jnp.sum(jnp.where(lane_f == tgt_f, probs, 0.0),
                     axis=-1, keepdims=True)               # (TB, 1)

    high_conf = conf > conf_threshold                      # (TB, 1) bool
    correct = first_argmax == tgt_f                        # (TB, 1) bool
    wrong_w = w_hc_wrong * jnp.where(tgt_f == 1.0, 2.0, 1.0)
    w = jnp.where(high_conf,
                  jnp.where(correct, w_hc_correct, wrong_w),
                  w_low)                                   # (TB, 1)

    loss = -w * jnp.log(p_true + EPS)                      # (TB, 1)

    # One combined reduction produces the merged output row:
    #   lane 0        <- sum_rows loss * task_weight[task(row)] / B   (total_loss)
    #   lane 1 + task <- sum_rows-in-task loss / B                    (task means)
    row = lax.broadcasted_iota(jnp.int32, (TB, OUT_LANES), 0)
    col = lax.broadcasted_iota(jnp.int32, (TB, OUT_LANES), 1)
    inv_b = 1.0 / float(B)
    wmat = jnp.zeros((TB, OUT_LANES), jnp.float32)
    for t in range(T):                                     # static unroll, tiny T
        in_task = (row >= t * B) & (row < (t + 1) * B)
        lane_w = jnp.where(col == t + 1, inv_b,
                           jnp.where(col == 0,
                                     float(task_weight_vec[t]) * inv_b, 0.0))
        wmat = wmat + jnp.where(in_task, lane_w, 0.0)

    out_ref[...] = jnp.sum(loss * wmat, axis=0, keepdims=True)   # (1, OUT_LANES)


# --------------------------------- wrapper ------------------------------------
def confidence_weighted_loss(predictions, targets, task_weights,
                             confidence_threshold=0.8,
                             high_conf_correct_weight=0.3,
                             high_conf_wrong_weight=3.0,
                             low_conf_weight=1.0):
    """predictions/targets: dicts of (B, C) f32 logits / (B,) int labels."""
    names = [n for n in predictions if n in targets]
    T = len(names)
    B, C = predictions[names[0]].shape
    assert T + 1 <= OUT_LANES

    # single packed input slab -> single input DMA
    logits = jnp.concatenate(
        [predictions[n].astype(jnp.float32) for n in names], axis=0)        # (T*B, C)
    labels = jnp.concatenate(
        [targets[n].astype(jnp.float32)[:, None] for n in names], axis=0)   # (T*B, 1)
    packed = jnp.concatenate([logits, labels], axis=-1)                     # (T*B, C+1)

    tw_vec = tuple(float(task_weights.get(n, 1.0)) for n in names)

    kernel = functools.partial(
        _cw_loss_kernel,
        T=T, B=B, C=C,
        conf_threshold=float(confidence_threshold),
        w_hc_correct=float(high_conf_correct_weight),
        w_hc_wrong=float(high_conf_wrong_weight),
        w_low=float(low_conf_weight),
        task_weight_vec=tw_vec,
    )

    out = pl.pallas_call(
        kernel,
        out_shape=jax.ShapeDtypeStruct((1, OUT_LANES), jnp.float32),
        grid_spec=pltpu.PrefetchScalarGridSpec(
            num_scalar_prefetch=0,
            grid=(1,),  # single invocation: problem is tiny / launch-bound
            in_specs=[pl.BlockSpec((T * B, C + 1), lambda i: (0, 0))],
            out_specs=pl.BlockSpec((1, OUT_LANES), lambda i: (0, 0)),
        ),
        compiler_params=pltpu.CompilerParams(
            dimension_semantics=("arbitrary",)),
        cost_estimate=pl.CostEstimate(
            flops=T * B * 10 * C,
            transcendentals=T * B * (C + 1),
            bytes_accessed=T * B * (C + 1) * 4 + OUT_LANES * 4),
    )(packed)

    # single slice of the merged result row; lane 0 = total, lanes 1..T = task means
    vec = out[0, :T + 1]
    losses = {f"loss_{n}": vec[1 + i] for i, n in enumerate(names)}
    losses["total_loss"] = vec[0]
    return losses


# ----------------------------- pure-JAX reference -----------------------------
def confidence_weighted_loss_ref(predictions, targets, task_weights,
                                 confidence_threshold=0.8,
                                 high_conf_correct_weight=0.3,
                                 high_conf_wrong_weight=3.0,
                                 low_conf_weight=1.0):
    losses = {}
    total = jnp.float32(0.0)
    for name, logits in predictions.items():
        if name not in targets:
            continue
        t = targets[name].astype(jnp.int32)
        probs = jax.nn.softmax(logits.astype(jnp.float32), axis=1)
        conf = jnp.max(probs, axis=1)
        pred_class = jnp.argmax(probs, axis=1)
        p_true = jnp.take_along_axis(probs, t[:, None], axis=1)[:, 0]
        high = conf > confidence_threshold
        correct = pred_class == t
        wrong_w = high_conf_wrong_weight * jnp.where(t == 1, 2.0, 1.0)
        w = jnp.where(high,
                      jnp.where(correct, high_conf_correct_weight, wrong_w),
                      low_conf_weight)
        task_loss = jnp.mean(-w * jnp.log(p_true + EPS))
        losses[f"loss_{name}"] = task_loss
        total = total + task_weights.get(name, 1.0) * task_loss
    losses["total_loss"] = total
    return losses


# ------------------------------------ main -------------------------------------
if __name__ == "__main__":
    key = jax.random.PRNGKey(0)
    k1, k2, k3, k4 = jax.random.split(key, 4)

    # scale logits so confidences span both sides of the 0.8 threshold
    predictions = {
        "task_a": 3.0 * jax.random.normal(k1, (BATCH, NUM_CLASSES), jnp.float32),
        "task_b": 3.0 * jax.random.normal(k2, (BATCH, NUM_CLASSES), jnp.float32),
    }
    targets = {
        "task_a": jax.random.randint(k3, (BATCH,), 0, NUM_CLASSES, jnp.int32),
        "task_b": jax.random.randint(k4, (BATCH,), 0, NUM_CLASSES, jnp.int32),
    }

    out = confidence_weighted_loss(predictions, targets, TASK_WEIGHTS)
    out = jax.block_until_ready(out)

    ref = confidence_weighted_loss_ref(predictions, targets, TASK_WEIGHTS)
    for k in ref:
        assert jnp.allclose(out[k], ref[k], atol=1e-5, rtol=1e-5), (
            f"mismatch for {k}: {out[k]} vs {ref[k]}")

    print("KERNEL_OK")
</pallas_src>

<mosaic_0001>
module attributes {stable_mosaic.version = 11 : i64} {
  func.func @_cw_loss_kernel(%arg0: i32, %arg1: memref<16x5xf32, #tpu.memory_space<vmem>>, %arg2: memref<1x128xf32, #tpu.memory_space<vmem>>) attributes {dimension_semantics = [#tpu.dimension_semantics<arbitrary>], iteration_bounds = array<i64: 1>, scalar_prefetch = 0 : i64, scratch_operands = 0 : i64, tpu.core_type = #tpu.core_type<tc>, window_params = [{pipeline_mode = #tpu.pipeline_mode<synchronous>, transform_indices = @transform_0, window_bounds = array<i64: 16, 5>}, {pipeline_mode = #tpu.pipeline_mode<synchronous>, transform_indices = @transform_1, window_bounds = array<i64: 1, 128>}]} {
    %c0 = arith.constant 0 : index
    %c0_0 = arith.constant 0 : index
    %0 = vector.load %arg1[%c0, %c0_0] : memref<16x5xf32, #tpu.memory_space<vmem>>, vector<16x5xf32>
    %1 = vector.extract_strided_slice %0 {offsets = [0, 0], sizes = [16, 4], strides = [1, 1]} : vector<16x5xf32> to vector<16x4xf32>
    %2 = vector.extract_strided_slice %0 {offsets = [0, 4], sizes = [16, 1], strides = [1, 1]} : vector<16x5xf32> to vector<16x1xf32>
    %3 = tpu.iota {dimensions = array<i32: 1>} : vector<16x4xi32>
    %4 = arith.sitofp %3 : vector<16x4xi32> to vector<16x4xf32>
    %cst = arith.constant dense<0xFF800000> : vector<16xf32>
    %5 = vector.multi_reduction <maximumf>, %1, %cst [1] : vector<16x4xf32> to vector<16xf32>
    %6 = vector.shape_cast %5 : vector<16xf32> to vector<16x1xf32>
    %7 = vector.broadcast %6 : vector<16x1xf32> to vector<16x4xf32>
    %8 = arith.subf %1, %7 : vector<16x4xf32>
    %9 = math.exp %8 : vector<16x4xf32>
    %cst_1 = arith.constant dense<0.000000e+00> : vector<16xf32>
    %10 = vector.multi_reduction <add>, %9, %cst_1 [1] : vector<16x4xf32> to vector<16xf32>
    %11 = vector.shape_cast %10 : vector<16xf32> to vector<16x1xf32>
    %12 = vector.broadcast %11 : vector<16x1xf32> to vector<16x4xf32>
    %13 = arith.divf %9, %12 : vector<16x4xf32>
    %cst_2 = arith.constant dense<0xFF800000> : vector<16xf32>
    %14 = vector.multi_reduction <maximumf>, %13, %cst_2 [1] : vector<16x4xf32> to vector<16xf32>
    %15 = vector.shape_cast %14 : vector<16xf32> to vector<16x1xf32>
    %16 = vector.broadcast %15 : vector<16x1xf32> to vector<16x4xf32>
    %17 = arith.cmpf oeq, %13, %16 : vector<16x4xf32>
    %cst_3 = arith.constant 4.000000e+00 : f32
    %18 = vector.broadcast %cst_3 : f32 to vector<16x4xf32>
    %19 = arith.select %17, %4, %18 : vector<16x4xi1>, vector<16x4xf32>
    %cst_4 = arith.constant dense<0x7F800000> : vector<16xf32>
    %20 = vector.multi_reduction <minimumf>, %19, %cst_4 [1] : vector<16x4xf32> to vector<16xf32>
    %21 = vector.shape_cast %20 : vector<16xf32> to vector<16x1xf32>
    %22 = vector.broadcast %2 : vector<16x1xf32> to vector<16x4xf32>
    %23 = arith.cmpf oeq, %4, %22 : vector<16x4xf32>
    %cst_5 = arith.constant 0.000000e+00 : f32
    %24 = vector.broadcast %cst_5 : f32 to vector<16x4xf32>
    %25 = arith.select %23, %13, %24 : vector<16x4xi1>, vector<16x4xf32>
    %cst_6 = arith.constant dense<0.000000e+00> : vector<16xf32>
    %26 = vector.multi_reduction <add>, %25, %cst_6 [1] : vector<16x4xf32> to vector<16xf32>
    %27 = vector.shape_cast %26 : vector<16xf32> to vector<16x1xf32>
    %cst_7 = arith.constant 8.000000e-01 : f32
    %28 = vector.broadcast %cst_7 : f32 to vector<16x1xf32>
    %29 = arith.cmpf ogt, %15, %28 : vector<16x1xf32>
    %30 = arith.cmpf oeq, %21, %2 : vector<16x1xf32>
    %cst_8 = arith.constant 1.000000e+00 : f32
    %31 = vector.broadcast %cst_8 : f32 to vector<16x1xf32>
    %32 = arith.cmpf oeq, %2, %31 : vector<16x1xf32>
    %cst_9 = arith.constant 2.000000e+00 : f32
    %cst_10 = arith.constant 1.000000e+00 : f32
    %33 = vector.broadcast %cst_9 : f32 to vector<16x1xf32>
    %34 = vector.broadcast %cst_10 : f32 to vector<16x1xf32>
    %35 = arith.select %32, %33, %34 : vector<16x1xi1>, vector<16x1xf32>
    %cst_11 = arith.constant 3.000000e+00 : f32
    %36 = vector.broadcast %cst_11 : f32 to vector<16x1xf32>
    %37 = arith.mulf %36, %35 : vector<16x1xf32>
    %cst_12 = arith.constant 3.000000e-01 : f32
    %38 = vector.broadcast %cst_12 : f32 to vector<16x1xf32>
    %39 = arith.select %30, %38, %37 : vector<16x1xi1>, vector<16x1xf32>
    %cst_13 = arith.constant 1.000000e+00 : f32
    %40 = vector.broadcast %cst_13 : f32 to vector<16x1xf32>
    %41 = arith.select %29, %39, %40 : vector<16x1xi1>, vector<16x1xf32>
    %cst_14 = arith.constant 0.000000e+00 : f32
    %42 = vector.broadcast %cst_14 : f32 to vector<16x1xf32>
    %43 = arith.subf %42, %41 : vector<16x1xf32>
    %cst_15 = arith.constant 9.99999993E-9 : f32
    %44 = vector.broadcast %cst_15 : f32 to vector<16x1xf32>
    %45 = arith.addf %27, %44 : vector<16x1xf32>
    %46 = math.log %45 : vector<16x1xf32>
    %47 = arith.mulf %43, %46 : vector<16x1xf32>
    %48 = tpu.iota {dimensions = array<i32: 0>} : vector<16x128xi32>
    %49 = tpu.iota {dimensions = array<i32: 1>} : vector<16x128xi32>
    %cst_16 = arith.constant 0.000000e+00 : f32
    %50 = vector.broadcast %cst_16 : f32 to vector<16x128xf32>
    %c0_i32 = arith.constant 0 : i32
    %51 = vector.broadcast %c0_i32 : i32 to vector<16x128xi32>
    %52 = arith.cmpi sge, %48, %51 : vector<16x128xi32>
    %c8_i32 = arith.constant 8 : i32
    %53 = vector.broadcast %c8_i32 : i32 to vector<16x128xi32>
    %54 = arith.cmpi slt, %48, %53 : vector<16x128xi32>
    %55 = arith.andi %52, %54 : vector<16x128xi1>
    %c1_i32 = arith.constant 1 : i32
    %56 = vector.broadcast %c1_i32 : i32 to vector<16x128xi32>
    %57 = arith.cmpi eq, %49, %56 : vector<16x128xi32>
    %c0_i32_17 = arith.constant 0 : i32
    %58 = vector.broadcast %c0_i32_17 : i32 to vector<16x128xi32>
    %59 = arith.cmpi eq, %49, %58 : vector<16x128xi32>
    %cst_18 = arith.constant 1.250000e-01 : f32
    %cst_19 = arith.constant 0.000000e+00 : f32
    %60 = vector.broadcast %cst_18 : f32 to vector<16x128xf32>
    %61 = vector.broadcast %cst_19 : f32 to vector<16x128xf32>
    %62 = arith.select %59, %60, %61 : vector<16x128xi1>, vector<16x128xf32>
    %cst_20 = arith.constant 1.250000e-01 : f32
    %63 = vector.broadcast %cst_20 : f32 to vector<16x128xf32>
    %64 = arith.select %57, %63, %62 : vector<16x128xi1>, vector<16x128xf32>
    %cst_21 = arith.constant 0.000000e+00 : f32
    %65 = vector.broadcast %cst_21 : f32 to vector<16x128xf32>
    %66 = arith.select %55, %64, %65 : vector<16x128xi1>, vector<16x128xf32>
    %67 = arith.addf %50, %66 : vector<16x128xf32>
    %c8_i32_22 = arith.constant 8 : i32
    %68 = vector.broadcast %c8_i32_22 : i32 to vector<16x128xi32>
    %69 = arith.cmpi sge, %48, %68 : vector<16x128xi32>
    %c16_i32 = arith.constant 16 : i32
    %70 = vector.broadcast %c16_i32 : i32 to vector<16x128xi32>
    %71 = arith.cmpi slt, %48, %70 : vector<16x128xi32>
    %72 = arith.andi %69, %71 : vector<16x128xi1>
    %c2_i32 = arith.constant 2 : i32
    %73 = vector.broadcast %c2_i32 : i32 to vector<16x128xi32>
    %74 = arith.cmpi eq, %49, %73 : vector<16x128xi32>
    %c0_i32_23 = arith.constant 0 : i32
    %75 = vector.broadcast %c0_i32_23 : i32 to vector<16x128xi32>
    %76 = arith.cmpi eq, %49, %75 : vector<16x128xi32>
    %cst_24 = arith.constant 6.250000e-02 : f32
    %cst_25 = arith.constant 0.000000e+00 : f32
    %77 = vector.broadcast %cst_24 : f32 to vector<16x128xf32>
    %78 = vector.broadcast %cst_25 : f32 to vector<16x128xf32>
    %79 = arith.select %76, %77, %78 : vector<16x128xi1>, vector<16x128xf32>
    %cst_26 = arith.constant 1.250000e-01 : f32
    %80 = vector.broadcast %cst_26 : f32 to vector<16x128xf32>
    %81 = arith.select %74, %80, %79 : vector<16x128xi1>, vector<16x128xf32>
    %cst_27 = arith.constant 0.000000e+00 : f32
    %82 = vector.broadcast %cst_27 : f32 to vector<16x128xf32>
    %83 = arith.select %72, %81, %82 : vector<16x128xi1>, vector<16x128xf32>
    %84 = arith.addf %67, %83 : vector<16x128xf32>
    %85 = vector.broadcast %47 : vector<16x1xf32> to vector<16x128xf32>
    %86 = arith.mulf %85, %84 : vector<16x128xf32>
    %cst_28 = arith.constant dense<0.000000e+00> : vector<128xf32>
    %87 = vector.multi_reduction <add>, %86, %cst_28 [0] : vector<16x128xf32> to vector<128xf32>
    %88 = vector.shape_cast %87 : vector<128xf32> to vector<1x128xf32>
    %c0_29 = arith.constant 0 : index
    %c0_30 = arith.constant 0 : index
    %89 = vector.load %arg2[%c0_29, %c0_30] : memref<1x128xf32, #tpu.memory_space<vmem>>, vector<1x128xf32>
    tpu.vector_store %arg2[%c0_29, %c0_30], %88 {strides = array<i32>} : memref<1x128xf32, #tpu.memory_space<vmem>>, vector<1x128xf32>,
    return
  }
  func.func @transform_0(%arg0: i32) -> (i32, i32) {
    %c0_i32 = arith.constant 0 : i32
    %c0_i32_0 = arith.constant 0 : i32
    %c0_i32_1 = arith.constant 0 : i32
    return %c0_i32, %c0_i32_0 : i32, i32
  }
  func.func @transform_1(%arg0: i32) -> (i32, i32) {
    %c0_i32 = arith.constant 0 : i32
    %c0_i32_0 = arith.constant 0 : i32
    %c0_i32_1 = arith.constant 0 : i32
    return %c0_i32, %c0_i32_0 : i32, i32
  }
}

</mosaic_0001>

<bundles_post_ra>
// kernel: tpu_custom_call.1
= control target key start
LH: loop header
LB: loop body
LE: loop exit
PB: predicated region body
PF: predicated region fallthrough
CT: control target
= control target key end

     0   :  { %vm14_vm0 = vcmask 31744   ;;  %s265_s0 = inlined_call_operand.vmem [shape: f32[16,5], index: 0, kind: input, shape index: {}]   ;;  %s266_s1 = inlined_call_operand.hbm [shape: f32[1,128], index: 1, kind: output, shape index: {}]  }
   0x1   :  { %v220_v0 = vld [vmem:[%s265_s0] sm:$0xff]  ;;  %v225_v1 = vld [vmem:[%s265_s0 + $0x8] sm:$0xff] }
   0x2   :  { %6 = vsyncpa [#allocation3], 0  ;;  %v15_v2 = vsel %vm14_vm0, %v220_v0, -inf  ;;  %v18_v3 = vsel %vm14_vm0, %v225_v1, -inf  ;;  %v203_v4 = vmov 4   ;;  %v11_v16 = vlaneseq  ;;  %s206_s0 = smov [#allocation2]  }
   0x3   :  { %16 = vmax.xlane.f32.xlu0 %v15_v2  ;;  %166 = vset.pattern.permute.xlu1 %v203_v4  ;;  %vm77_vm5 = vcmp.eq.f32.partialorder %v220_v0, 1.0  ;;  %v204_v42 = vmov 1.0   ;;  %vm78_vm6 = vcmp.eq.f32.partialorder %v225_v1, 1.0  ;;  %v205_v61 = vmov 0.0   ;;  %s153_s10 = sshll.u32 %s206_s0, 4  ;;  %s154_s10 = int_to_ptr.vmem [resolvable:$true] %s153_s10 }
   0x4   :  { %165 = vset.pattern.permute.xlu0 %v203_v4  ;;  %v237_v18 = vand.u32 127, %v11_v16  ;;  %v79_v43 = vsel %vm77_vm5, 2.0, %v204_v42  ;;  %v80_v45 = vsel %vm78_vm6, 2.0, %v204_v42  ;;  %s179_s11 = scalar_lea.vmem %s154_s10, 16  ;;  %s183_s12 = scalar_lea.vmem %s154_s10, 32 }
   0x5   :  { %v81_v44 = vmul.f32 3.0, %v79_v43  ;;  %v82_v49 = vmul.f32 3.0, %v80_v45  ;;  %p180_p0 = scmp.ne.s32.totalorder %s154_s10, %s179_s11  ;;  %p184_p1 = scmp.lt.s32.totalorder %s154_s10, %s154_s10 }
   0x6   :  { %v13_v19 = vcvt.s32.f32 %v237_v18  ;;  %vm107_vm11 = vcmp.eq.s32.totalorder %v237_v18, 0  ;;  %vm106_vm12 = vcmp.eq.s32.totalorder %v237_v18, 1  ;;  %vm120_vm13 = vcmp.eq.s32.totalorder %v237_v18, 2  ;;  %p185_p2 = scmp.lt.s32.totalorder %s183_s12, %s179_s11 }
   0x7   :  { %19 = vmax.xlane.f32.xlu0 %v18_v3  ;;  %v108_v62 = vsel %vm107_vm11, 0.125, %v205_v61  ;;  %v121_v63 = vsel %vm107_vm11, 0.0625, %v205_v61 }
   0x8   :  { %v122_v2 = vsel %vm120_vm13, 0.125, %v121_v63  ;;  %p186_p3 = por %p185_p2, %p184_p1 }
   0xa   :  { %p187_p4 = pnand %p186_p3, %p180_p0 }
  0x1d   :  { %55 = vperm.xlu0 %165, %v220_v0  }
  0x90   :  { %v17_v5 = vpop.xlane.xlu0 %16 }
  0x91   :  { %v21_v6 = vsub.f32 %v220_v0, %v17_v5 }
  0x93   :  { %v23_v7 = vmul.f32 1.442695, %v21_v6 }
  0x94   :  { %v20_v8 = vpop.xlane.xlu0 %19 }
  0x95   :  { %167 = vpow2.f32 %v23_v7  ;;  %v22_v9 = vsub.f32 %v225_v1, %v20_v8 }
  0x97   :  { %v25_v10 = vmul.f32 1.442695, %v22_v9 }
  0x99   :  { %169 = vpow2.f32 %v25_v10 }
  0x9c   :  { %v56_v20 = vpop.permute.xlu0 %55 }
  0x9d   :  { %vm63_vm1 = vcmp.eq.f32.partialorder %v13_v19, %v56_v20 }
  0x9f   :  { %v168_v11 = vpop.eup %167 }
  0xa0   :  { %v27_v12 = vsel %vm14_vm0, %v168_v11, 0.0 }
  0xa1   :  { %28 = vadd.xlane.f32.xlu1 %v27_v12 }
  0xa3   :  { %v170_v13 = vpop.eup %169 }
  0xa4   :  { %v30_v14 = vsel %vm14_vm0, %v170_v13, 0.0 }
  0xa5   :  { %31 = vadd.xlane.f32.xlu1 %v30_v14 }
  0xb6   :  { %60 = vperm.xlu1 %166, %v225_v1  }
 0x12e   :  { %v29_v15 = vpop.xlane.xlu1 %28 }
 0x12f   :  { %171 = vrcp.f32 %v29_v15 }
 0x132   :  { %v32_v17 = vpop.xlane.xlu1 %31 }
 0x133   :  { %173 = vrcp.f32 %v32_v17 }
 0x136   :  { %v61_v23 = vpop.permute.xlu1 %60 }
 0x137   :  { %vm64_vm2 = vcmp.eq.f32.partialorder %v13_v19, %v61_v23 }
 0x139   :  { %v172_v21 = vpop.eup %171 }
 0x13a   :  { %v34_v22 = vmul.f32 %v172_v21, %v168_v11 }
 0x13c   :  { %v37_v24 = vsel %vm14_vm0, %v34_v22, -inf  ;;  %v65_v26 = vsel %vm63_vm1, %v34_v22, 0.0 }
 0x13d   :  { %v174_v25 = vpop.eup %173  ;;  %38 = vmax.xlane.f32.xlu1 %v37_v24  ;;  %v67_v29 = vsel %vm14_vm0, %v65_v26, 0.0 }
 0x13e   :  { %v36_v27 = vmul.f32 %v174_v25, %v170_v13 }
 0x140   :  { %v40_v28 = vsel %vm14_vm0, %v36_v27, -inf  ;;  %v66_v30 = vsel %vm64_vm2, %v36_v27, 0.0 }
 0x141   :  { %41 = vmax.xlane.f32.xlu0 %v40_v28  ;;  %68 = vadd.xlane.f32.xlu1 %v67_v29  ;;  %v70_v31 = vsel %vm14_vm0, %v66_v30, 0.0 }
 0x145   :  { %71 = vadd.xlane.f32.xlu1 %v70_v31 }
 0x1ca   :  { %v39_v32 = vpop.xlane.xlu1 %38 }
 0x1cb   :  { %vm43_vm3 = vcmp.eq.f32.partialorder %v34_v22, %v39_v32  ;;  %vm73_vm8 = vcmp.gt.f32.partialorder %v39_v32, 0.8 }
 0x1cc   :  { %v45_v33 = vsel %vm43_vm3, %v13_v19, 4.0 }
 0x1cd   :  { %v47_v34 = vsel %vm14_vm0, %v45_v33, inf }
 0x1ce   :  { %48 = vmin.xlane.f32.xlu1 %v47_v34  ;;  %v42_v35 = vpop.xlane.xlu0 %41  ;;  %v69_v38 = vpop.xlane.xlu1 %68 }
 0x1cf   :  { %vm44_vm4 = vcmp.eq.f32.partialorder %v36_v27, %v42_v35  ;;  %v89_v39 = vadd.f32 1e-08, %v69_v38  ;;  %vm74_vm10 = vcmp.gt.f32.partialorder %v42_v35, 0.8 }
 0x1d0   :  { %v46_v36 = vsel %vm44_vm4, %v13_v19, 4.0 }
 0x1d1   :  { %v50_v37 = vsel %vm14_vm0, %v46_v36, inf  ;;  %175 = vlog2.f32 %v89_v39 }
 0x1d2   :  { %51 = vmin.xlane.f32.xlu1 %v50_v37  ;;  %v72_v40 = vpop.xlane.xlu1 %71 }
 0x1d3   :  { %v90_v41 = vadd.f32 1e-08, %v72_v40 }
 0x1d5   :  { %177 = vlog2.f32 %v90_v41 }
 0x1db   :  { %v176_v47 = vpop.eup %175 }
 0x1dc   :  { %v92_v51 = vmul.f32 0.6931472, %v176_v47 }
 0x1df   :  { %v178_v54 = vpop.eup %177 }
 0x1e0   :  { %v94_v58 = vmul.f32 0.6931472, %v178_v54 }
 0x25b   :  { %v49_v46 = vpop.xlane.xlu1 %48 }
 0x25c   :  { %vm75_vm7 = vcmp.eq.f32.partialorder %v49_v46, %v220_v0  ;;  %v109_v0 = vsel %vm106_vm12, 0.125, %v108_v62 }
 0x25d   :  { %v83_v48 = vsel %vm75_vm7, 0.3, %v81_v44 }
 0x25e   :  { %v85_v50 = vsel %vm73_vm8, %v83_v48, 1.0 }
 0x25f   :  { %v87_v52 = vsub.f32 0.0, %v85_v50  ;;  %v52_v53 = vpop.xlane.xlu1 %51 }
 0x260   :  { %vm76_vm9 = vcmp.eq.f32.partialorder %v52_v53, %v225_v1 }
 0x261   :  { %v84_v55 = vsel %vm76_vm9, 0.3, %v82_v49  ;;  %v95_v56 = vmul.f32 %v92_v51, %v87_v52 }
 0x262   :  { %v86_v57 = vsel %vm74_vm10, %v84_v55, 1.0 }
 0x263   :  { %v88_v59 = vsub.f32 0.0, %v86_v57  ;;  %129 = vperm.xlu1 %166, %v95_v56  }
 0x265   :  { %v96_v60 = vmul.f32 %v94_v58, %v88_v59 }
 0x267   :  { %134 = vperm.xlu0 %165, %v96_v60  }
 0x2e2   :  { %v130_v1 = vpop.permute.xlu1 %129 }
 0x2e3   :  { %v137_v4 = vmul.f32 %v130_v1, %v109_v0 }
 0x2e6   :  { %v135_v3 = vpop.permute.xlu0 %134 }
 0x2e7   :  { %v138_v5 = vmul.f32 %v135_v3, %v122_v2 }
 0x2e9   :  { %v139_v6 = vadd.f32 %v138_v5, %v137_v4 }
 0x2eb   :  { %v140_v7 = vrot.slane %v139_v6, 4 }
 0x2ed   :  { %v141_v8 = vadd.f32 %v140_v7, %v139_v6 }
 0x2ef   :  { %v142_v9 = vrot.slane %v141_v8, 2 }
 0x2f1   :  { %v143_v10 = vadd.f32 %v142_v9, %v141_v8 }
 0x2f3   :  { %v144_v11 = vrot.slane %v143_v10, 1 }
 0x2f5   :  { %v145_v12 = vadd.f32 %v144_v11, %v143_v10 }
 0x2f7   :  { %146 = vst [vmem:[#allocation2] sm:$0x1] %v145_v12 }
 0x2f8   :  { %190 = shalt.err (!%p187_p4)
}
 0x2f9   :  { %s191_s15 = scalar_lea.hbm %s266_s1, 16 }
 0x2fa   :  { %p192_p5 = scmp.ne.s32.totalorder %s266_s1, %s191_s15  ;;  %p195_p6 = scmp.lt.u32.totalorder %s191_s15, %s266_s1 }
 0x2fc   :  { %p197_p7 = pnand %p195_p6, %p192_p5 }
 0x2fe   :  { %200 = shalt.err (!%p197_p7)
}
 0x2ff   :  { %156 = dma.vmem_to_hbm [thread:$0]  %s154_s10, 16, %s266_s1, [#allocation3]  }
 0x300   :  { %201 = dma.done.wait [#allocation3], 16  }
 0x301   :  { %202 = vsyncadd [#allocation3], 4294967280 }
 0x302   :  { %160 = vsyncpa [#allocation3], 1 }

</bundles_post_ra>
